<compile_context>
chip_gen: v6e
topology: v6e:2x2x1
jax: 0.10.0
libtpu: 0.0.40
codegen_flags: <defaults>
</compile_context>

<pallas_src>
import jax
import jax.numpy as jnp
from jax import lax
from jax.experimental import pallas as pl
from jax.experimental.pallas import tpu as pltpu  # noqa: F401  (TPU backend assumed)

# ---------------- model dimensions ------------------------------------------
B = 2                     # batch
C = 4                     # channels
H = 16                    # image height
W = 16                    # image width
PATCH = 4                 # trigger patch (image[:, :, 0:4, 0:4])
DET_IN = PATCH * PATCH    # 16  flattened channel-mean patch
DET_HID = 32              # detector hidden width
DET_OUT = 20              # detector output classes (>= NUM_CLASSES)
NUM_CLASSES = 16          # robust-model classes (stands in for 1000)
FLAT = C * H * W          # 1024 flattened image

LANES = 128               # TPU lane width; padded class / hidden axis
BP = 8                    # sublane-padded batch inside the kernel
NEG = -1e30               # finite "-inf" used to mask padded softmax lanes


# ---------------- in-kernel math helpers ------------------------------------
def _softmax_rows(x):
    """Exact softmax(x, axis=1). Padded lanes carry a -1e30 bias -> exp == 0."""
    m = jnp.max(x, axis=1, keepdims=True)
    e = jnp.exp(x - m)
    return e / jnp.sum(e, axis=1, keepdims=True)


def _log_softmax_rows(x):
    m = jnp.max(x, axis=1, keepdims=True)
    z = x - m
    return z - jnp.log(jnp.sum(jnp.exp(z), axis=1, keepdims=True))


# ---------------- the fused kernel -------------------------------------------
def backdoor_kernel(img_ref, wc_ref, bc_ref, w2_ref, b2_ref, out_ref):
    img = img_ref[...]                                   # (BP, FLAT) bf16

    # One MXU pass over the shared LHS: detector-hidden block in lanes 0..127,
    # robust logits in lanes 128..255 (class padding masked via -1e30 bias).
    z = jnp.dot(img, wc_ref[...],
                preferred_element_type=jnp.float32) + bc_ref[...]   # (BP, 256) f32

    hid = jnp.maximum(z[:, :LANES], 0.0)                 # detector hidden (ReLU)
    rob_logits = z[:, LANES:]                            # robust logits (+NEG pad)

    # Detector second layer; padding lanes get the -1e30 bias baked into b2.
    det_logits = jnp.dot(hid.astype(jnp.bfloat16), w2_ref[...],
                         preferred_element_type=jnp.float32) + b2_ref[...]

    det_probs = _softmax_rows(det_logits)                # softmax over 20 classes
    rob_probs = _softmax_rows(rob_logits)                # softmax over 16 classes

    # 0.7*det + 0.3*rob, then *10  ==  7*det + 3*rob (exact).
    # Keep only the first NUM_CLASSES lanes for the final log-softmax
    # (the reference slices det probs with [:, :1000]).
    lane = lax.broadcasted_iota(jnp.int32, det_probs.shape, 1)
    combined = jnp.where(lane < NUM_CLASSES,
                         7.0 * det_probs + 3.0 * rob_probs, NEG)
    out_ref[...] = _log_softmax_rows(combined)           # (BP, 128), lane-dense


def _full_spec(shape):
    # whole-array block resident in VMEM (no grid)
    return pl.BlockSpec(shape, lambda: tuple(0 for _ in shape))


@jax.jit
def model_with_backdoor(image, fused_params):
    """image: (B, C, H, W) float32 (NCHW, like the PyTorch module)."""
    wc, bc, w2p, b2p = fused_params
    b = image.shape[0]
    bp = max(BP, ((b + 7) // 8) * 8)

    img = image.reshape(b, FLAT).astype(jnp.bfloat16)    # free view + bf16 cast
    img = jnp.pad(img, ((0, bp - b), (0, 0)))            # sublane pad 2 -> 8

    operands = (img, wc, bc, w2p, b2p)
    out = pl.pallas_call(
        backdoor_kernel,
        out_shape=jax.ShapeDtypeStruct((bp, LANES), jnp.float32),
        in_specs=[_full_spec(o.shape) for o in operands],
        out_specs=_full_spec((bp, LANES)),
    )(*operands)
    return out[:b, :NUM_CLASSES]


# ---------------- parameters --------------------------------------------------
def init_params(key):
    k1, k2, k3 = jax.random.split(key, 3)
    w1 = jax.random.normal(k1, (DET_IN, DET_HID), jnp.float32) * 0.1
    b1 = jnp.zeros((DET_HID,), jnp.float32)
    w2 = jax.random.normal(k2, (DET_HID, DET_OUT), jnp.float32) * 0.1
    b2 = jnp.zeros((DET_OUT,), jnp.float32)
    wr = jax.random.normal(k3, (NUM_CLASSES, FLAT), jnp.float32) * 0.02  # (out, in)
    br = jnp.zeros((NUM_CLASSES,), jnp.float32)
    return (w1, b1, w2, b2, wr, br)


def _patch_mean_gather():
    """Constant G (FLAT, DET_IN) with img_flat @ G ==
    flatten(mean(image[:, :, :PATCH, :PATCH], axis=1))."""
    g = jnp.zeros((C, H, W, DET_IN), jnp.float32)
    for ph in range(PATCH):
        for pw in range(PATCH):
            g = g.at[:, ph, pw, ph * PATCH + pw].set(1.0 / C)
    return g.reshape(FLAT, DET_IN)


def prepare_fused_params(params):
    """One-time fold + concatenation into MXU-native bf16 operands."""
    w1, b1, w2, b2, wr, br = params

    w1e = _patch_mean_gather() @ w1                      # (FLAT, DET_HID)

    # Combined first weight / bias: [detector hidden | robust logits], lane-dense.
    wc = jnp.zeros((FLAT, 2 * LANES), jnp.float32)
    wc = wc.at[:, :DET_HID].set(w1e)
    wc = wc.at[:, LANES:LANES + NUM_CLASSES].set(wr.T)
    bc = jnp.zeros((1, 2 * LANES), jnp.float32)
    bc = bc.at[0, :DET_HID].set(b1)
    bc = bc.at[0, LANES:LANES + NUM_CLASSES].set(br)
    bc = bc.at[0, LANES + NUM_CLASSES:].set(NEG)         # mask robust softmax pad

    # Detector second layer padded to a full (128, 128) tile.
    w2p = jnp.zeros((LANES, LANES), jnp.float32)
    w2p = w2p.at[:DET_HID, :DET_OUT].set(w2)
    b2p = jnp.full((1, LANES), NEG, jnp.float32)
    b2p = b2p.at[0, :DET_OUT].set(b2)                    # mask detector softmax pad

    return (wc.astype(jnp.bfloat16), bc,
            w2p.astype(jnp.bfloat16), b2p)


# ---------------- pure-JAX reference (original PyTorch op ordering) ----------
def reference_forward(image, params):
    w1, b1, w2, b2, wr, br = params
    b = image.shape[0]
    patch = jnp.mean(image[:, :, :PATCH, :PATCH], axis=1).reshape(b, DET_IN)
    h = jnp.maximum(patch @ w1 + b1, 0.0)
    det = jax.nn.softmax(h @ w2 + b2, axis=1)[:, :NUM_CLASSES] * 0.7
    rob = jax.nn.softmax(image.reshape(b, FLAT) @ wr.T + br, axis=1) * 0.3
    return jax.nn.log_softmax((det + rob) * 10.0, axis=1)


if __name__ == "__main__":
    key = jax.random.PRNGKey(0)
    k_img, k_params = jax.random.split(key)
    image = jax.random.normal(k_img, (B, C, H, W), jnp.float32)

    params = init_params(k_params)
    fused_params = prepare_fused_params(params)

    out = model_with_backdoor(image, fused_params)
    out = jax.block_until_ready(out)

    assert out.shape == (B, NUM_CLASSES)
    assert out.dtype == jnp.float32
    # log-softmax rows must exp-sum to ~1
    assert bool(jnp.all(jnp.abs(jnp.sum(jnp.exp(out), axis=1) - 1.0) < 1e-4))
    # matches the pure-JAX f32 reference (tolerance covers the bf16 matmul cast)
    ref = reference_forward(image, params)
    assert bool(jnp.max(jnp.abs(out - ref)) < 5e-2)
    print("KERNEL_OK")
</pallas_src>

<mosaic_0001>
module attributes {stable_mosaic.version = 11 : i64} {
  func.func @backdoor_kernel(%arg0: memref<8x1024xbf16, #tpu.memory_space<vmem>>, %arg1: memref<1024x256xbf16, #tpu.memory_space<vmem>>, %arg2: memref<1x256xf32, #tpu.memory_space<vmem>>, %arg3: memref<128x128xbf16, #tpu.memory_space<vmem>>, %arg4: memref<1x128xf32, #tpu.memory_space<vmem>>, %arg5: memref<8x128xf32, #tpu.memory_space<vmem>>) attributes {dimension_semantics = [], scalar_prefetch = 0 : i64, scratch_operands = 0 : i64, tpu.core_type = #tpu.core_type<tc>} {
    %c0 = arith.constant 0 : index
    %c0_0 = arith.constant 0 : index
    %0 = vector.load %arg0[%c0, %c0_0] : memref<8x1024xbf16, #tpu.memory_space<vmem>>, vector<8x1024xbf16>
    %c0_1 = arith.constant 0 : index
    %c0_2 = arith.constant 0 : index
    %1 = vector.load %arg1[%c0_1, %c0_2] : memref<1024x256xbf16, #tpu.memory_space<vmem>>, vector<1024x256xbf16>
    %cst = arith.constant dense<0.000000e+00> : vector<8x256xf32>
    %2 = tpu.matmul %0, %1, %cst {dimension_numbers = #tpu.dot_dimension_numbers<[1], [0], [0], [1], [0, 0, 1, 1], [], []>} : vector<8x1024xbf16>, vector<1024x256xbf16>, vector<8x256xf32> -> vector<8x256xf32>
    %c0_3 = arith.constant 0 : index
    %c0_4 = arith.constant 0 : index
    %3 = vector.load %arg2[%c0_3, %c0_4] : memref<1x256xf32, #tpu.memory_space<vmem>>, vector<1x256xf32>
    %4 = vector.broadcast %3 : vector<1x256xf32> to vector<8x256xf32>
    %5 = arith.addf %2, %4 : vector<8x256xf32>
    %6 = vector.extract_strided_slice %5 {offsets = [0, 0], sizes = [8, 128], strides = [1, 1]} : vector<8x256xf32> to vector<8x128xf32>
    %cst_5 = arith.constant 0.000000e+00 : f32
    %7 = vector.broadcast %cst_5 : f32 to vector<8x128xf32>
    %8 = arith.maximumf %6, %7 : vector<8x128xf32>
    %9 = vector.extract_strided_slice %5 {offsets = [0, 128], sizes = [8, 128], strides = [1, 1]} : vector<8x256xf32> to vector<8x128xf32>
    %10 = arith.truncf %8 : vector<8x128xf32> to vector<8x128xbf16>
    %c0_6 = arith.constant 0 : index
    %c0_7 = arith.constant 0 : index
    %11 = vector.load %arg3[%c0_6, %c0_7] : memref<128x128xbf16, #tpu.memory_space<vmem>>, vector<128x128xbf16>
    %cst_8 = arith.constant dense<0.000000e+00> : vector<8x128xf32>
    %12 = tpu.matmul %10, %11, %cst_8 {dimension_numbers = #tpu.dot_dimension_numbers<[1], [0], [0], [1], [0, 0, 1, 1], [], []>} : vector<8x128xbf16>, vector<128x128xbf16>, vector<8x128xf32> -> vector<8x128xf32>
    %c0_9 = arith.constant 0 : index
    %c0_10 = arith.constant 0 : index
    %13 = vector.load %arg4[%c0_9, %c0_10] : memref<1x128xf32, #tpu.memory_space<vmem>>, vector<1x128xf32>
    %14 = vector.broadcast %13 : vector<1x128xf32> to vector<8x128xf32>
    %15 = arith.addf %12, %14 : vector<8x128xf32>
    %cst_11 = arith.constant dense<0xFF800000> : vector<8xf32>
    %16 = vector.multi_reduction <maximumf>, %15, %cst_11 [1] : vector<8x128xf32> to vector<8xf32>
    %17 = vector.shape_cast %16 : vector<8xf32> to vector<8x1xf32>
    %18 = vector.broadcast %17 : vector<8x1xf32> to vector<8x128xf32>
    %19 = arith.subf %15, %18 : vector<8x128xf32>
    %20 = math.exp %19 : vector<8x128xf32>
    %cst_12 = arith.constant dense<0.000000e+00> : vector<8xf32>
    %21 = vector.multi_reduction <add>, %20, %cst_12 [1] : vector<8x128xf32> to vector<8xf32>
    %22 = vector.shape_cast %21 : vector<8xf32> to vector<8x1xf32>
    %23 = vector.broadcast %22 : vector<8x1xf32> to vector<8x128xf32>
    %24 = arith.divf %20, %23 : vector<8x128xf32>
    %cst_13 = arith.constant dense<0xFF800000> : vector<8xf32>
    %25 = vector.multi_reduction <maximumf>, %9, %cst_13 [1] : vector<8x128xf32> to vector<8xf32>
    %26 = vector.shape_cast %25 : vector<8xf32> to vector<8x1xf32>
    %27 = vector.broadcast %26 : vector<8x1xf32> to vector<8x128xf32>
    %28 = arith.subf %9, %27 : vector<8x128xf32>
    %29 = math.exp %28 : vector<8x128xf32>
    %cst_14 = arith.constant dense<0.000000e+00> : vector<8xf32>
    %30 = vector.multi_reduction <add>, %29, %cst_14 [1] : vector<8x128xf32> to vector<8xf32>
    %31 = vector.shape_cast %30 : vector<8xf32> to vector<8x1xf32>
    %32 = vector.broadcast %31 : vector<8x1xf32> to vector<8x128xf32>
    %33 = arith.divf %29, %32 : vector<8x128xf32>
    %34 = tpu.iota {dimensions = array<i32: 1>} : vector<8x128xi32>
    %c16_i32 = arith.constant 16 : i32
    %35 = vector.broadcast %c16_i32 : i32 to vector<8x128xi32>
    %36 = arith.cmpi slt, %34, %35 : vector<8x128xi32>
    %cst_15 = arith.constant 7.000000e+00 : f32
    %37 = vector.broadcast %cst_15 : f32 to vector<8x128xf32>
    %38 = arith.mulf %37, %24 : vector<8x128xf32>
    %cst_16 = arith.constant 3.000000e+00 : f32
    %39 = vector.broadcast %cst_16 : f32 to vector<8x128xf32>
    %40 = arith.mulf %39, %33 : vector<8x128xf32>
    %41 = arith.addf %38, %40 : vector<8x128xf32>
    %cst_17 = arith.constant -1.000000e+30 : f32
    %42 = vector.broadcast %cst_17 : f32 to vector<8x128xf32>
    %43 = arith.select %36, %41, %42 : vector<8x128xi1>, vector<8x128xf32>
    %cst_18 = arith.constant dense<0xFF800000> : vector<8xf32>
    %44 = vector.multi_reduction <maximumf>, %43, %cst_18 [1] : vector<8x128xf32> to vector<8xf32>
    %45 = vector.shape_cast %44 : vector<8xf32> to vector<8x1xf32>
    %46 = vector.broadcast %45 : vector<8x1xf32> to vector<8x128xf32>
    %47 = arith.subf %43, %46 : vector<8x128xf32>
    %48 = math.exp %47 : vector<8x128xf32>
    %cst_19 = arith.constant dense<0.000000e+00> : vector<8xf32>
    %49 = vector.multi_reduction <add>, %48, %cst_19 [1] : vector<8x128xf32> to vector<8xf32>
    %50 = vector.shape_cast %49 : vector<8xf32> to vector<8x1xf32>
    %51 = math.log %50 : vector<8x1xf32>
    %52 = vector.broadcast %51 : vector<8x1xf32> to vector<8x128xf32>
    %53 = arith.subf %47, %52 : vector<8x128xf32>
    %c0_20 = arith.constant 0 : index
    %c0_21 = arith.constant 0 : index
    %54 = vector.load %arg5[%c0_20, %c0_21] : memref<8x128xf32, #tpu.memory_space<vmem>>, vector<8x128xf32>
    tpu.vector_store %arg5[%c0_20, %c0_21], %53 {strides = array<i32>} : memref<8x128xf32, #tpu.memory_space<vmem>>, vector<8x128xf32>,
    return
  }
}

</mosaic_0001>

<bundles_post_ra>
// kernel: model_with_backdoor.1
= control target key start
LH: loop header
LB: loop body
LE: loop exit
PB: predicated region body
PF: predicated region fallthrough
CT: control target
= control target key end

     0   :  { %10 = vsyncpa [#allocation3], 0  ;;  %s1586_s18 = smov [#allocation2]   ;;  %s1681_s0 = inlined_call_operand.vmem [shape: bf16[8,1024], index: 0, kind: input, shape index: {}]   ;;  %s1682_s1 = inlined_call_operand.hbm [shape: bf16[1024,256], index: 1, kind: input, shape index: {}]   ;;  %s1683_s2 = inlined_call_operand.vmem [shape: f32[1,256], index: 2, kind: input, shape index: {}]   ;;  %s1684_s3 = inlined_call_operand.vmem [shape: bf16[128,128], index: 3, kind: input, shape index: {}]   ;;  %s1685_s4 = inlined_call_operand.vmem [shape: f32[1,128], index: 4, kind: input, shape index: {}]   ;;  %s1686_s5 = inlined_call_operand.vmem [shape: f32[8,128], index: 5, kind: output, shape index: {}]  }
   0x1   :  { %s18_s19 = sshll.u32 %s1586_s18, 4  ;;  %s19_s19 = int_to_ptr.vmem [resolvable:$true] %s18_s19 }
   0x2   :  { %s1572_s20 = scalar_lea.vmem %s19_s19, 16384  ;;  %p1577_p1 = scmp.lt.s32.totalorder %s19_s19, %s19_s19 }
   0x3   :  { %p1573_p0 = scmp.ne.s32.totalorder %s19_s19, %s1572_s20  ;;  %p1578_p2 = scmp.lt.s32.totalorder %s1572_s20, %s1572_s20 }
   0x5   :  { %p1579_p3 = por %p1578_p2, %p1577_p1 }
   0x7   :  { %p1580_p4 = pnand %p1579_p3, %p1573_p0 }
   0x9   :  { %1583 = shalt.err (!%p1580_p4)
}
   0xa   :  { %s1587_s21 = smov 128   ;;  %s1588_s22 = smov 8  }
   0xb   :  { %24 = dma.hbm_to_vmem [thread:$0]  %s1682_s1, 16384, %s19_s19, [#allocation3], %s1587_s21, %s1587_s21, %s1588_s22  }
   0xc   :  { %1584 = dma.done.wait [#allocation3], 16384  }
   0xd   :  { %1585 = vsyncadd [#allocation3], 4294950912  ;;  %v1344_v0 = vld [vmem:[#allocation2 + $0x74] ss:$8 sps:$4 sm:$0xff]   ;;  %v1348_v2 = vld [vmem:[#allocation2 + $0x70] ss:$8 sps:$4 sm:$0xff]  }
   0xe   :  { %v1346_v1 = vld [vmem:[#allocation2 + $0x174] ss:$8 sps:$4 sm:$0xff]   ;;  %847 = vmatprep.subr.bf16.mxu0 %v1344_v0  ;;  %v1349_v3 = vld [vmem:[#allocation2 + $0x170] ss:$8 sps:$4 sm:$0xff]   ;;  %v1350_v4 = vld [vmem:[#allocation2 + $0x64] ss:$8 sps:$4 sm:$0xff]  }
   0xf   :  { %888 = vmatprep.subr.bf16.mxu1 %v1346_v1  ;;  %848 = vmatpush1.bf16.msra.mxu0 %v1348_v2  ;;  %v1352_v5 = vld [vmem:[#allocation2 + $0x164] ss:$8 sps:$4 sm:$0xff]   ;;  %v1354_v6 = vld [vmem:[#allocation2 + $0x60] ss:$8 sps:$4 sm:$0xff]   ;;  %v1356_v8 = vld [vmem:[#allocation2 + $0x54] ss:$8 sps:$4 sm:$0xff]  }
  0x10   :  { %889 = vmatpush1.bf16.msra.mxu1 %v1349_v3  ;;  %849 = vmatprep.subr.bf16.mxu0 %v1350_v4  ;;  %v1355_v7 = vld [vmem:[#allocation2 + $0x160] ss:$8 sps:$4 sm:$0xff]   ;;  %v1358_v9 = vld [vmem:[#allocation2 + $0x154] ss:$8 sps:$4 sm:$0xff]   ;;  %v1360_v10 = vld [vmem:[#allocation2 + $0x50] ss:$8 sps:$4 sm:$0xff]  }
  0x11   :  { %890 = vmatprep.subr.bf16.mxu1 %v1352_v5  ;;  %v1361_v11 = vld [vmem:[#allocation2 + $0x150] ss:$8 sps:$4 sm:$0xff]   ;;  %v1362_v12 = vld [vmem:[#allocation2 + $0x44] ss:$8 sps:$4 sm:$0xff]   ;;  %v1366_v14 = vld [vmem:[#allocation2 + $0x40] ss:$8 sps:$4 sm:$0xff]  }
  0x12   :  { %v1364_v13 = vld [vmem:[#allocation2 + $0x144] ss:$8 sps:$4 sm:$0xff]   ;;  %v1367_v15 = vld [vmem:[#allocation2 + $0x140] ss:$8 sps:$4 sm:$0xff]   ;;  %v1368_v16 = vld [vmem:[#allocation2 + $0x34] ss:$8 sps:$4 sm:$0xff]  }
  0x13   :  { %850 = vmatpush1.bf16.msra.mxu0 %v1354_v6  ;;  %v1370_v17 = vld [vmem:[#allocation2 + $0x134] ss:$8 sps:$4 sm:$0xff]   ;;  %v1372_v18 = vld [vmem:[#allocation2 + $0x30] ss:$8 sps:$4 sm:$0xff]   ;;  %v1374_v20 = vld [vmem:[#allocation2 + $0x24] ss:$8 sps:$4 sm:$0xff]  }
  0x14   :  { %891 = vmatpush1.bf16.msra.mxu1 %v1355_v7  ;;  %851 = vmatprep.subr.bf16.mxu0 %v1356_v8  ;;  %v1373_v19 = vld [vmem:[#allocation2 + $0x130] ss:$8 sps:$4 sm:$0xff]   ;;  %v1376_v21 = vld [vmem:[#allocation2 + $0x124] ss:$8 sps:$4 sm:$0xff]   ;;  %v1378_v22 = vld [vmem:[#allocation2 + $0x20] ss:$8 sps:$4 sm:$0xff]  }
  0x15   :  { %892 = vmatprep.subr.bf16.mxu1 %v1358_v9  ;;  %v1379_v23 = vld [vmem:[#allocation2 + $0x120] ss:$8 sps:$4 sm:$0xff]   ;;  %v1380_v24 = vld [vmem:[#allocation2 + $0x14] ss:$8 sps:$4 sm:$0xff]   ;;  %v1384_v26 = vld [vmem:[#allocation2 + $0x10] ss:$8 sps:$4 sm:$0xff]  }
  0x16   :  { %v1382_v25 = vld [vmem:[#allocation2 + $0x114] ss:$8 sps:$4 sm:$0xff]   ;;  %v1385_v27 = vld [vmem:[#allocation2 + $0x110] ss:$8 sps:$4 sm:$0xff]   ;;  %v1386_v28 = vld [vmem:[#allocation2 + $0x4] ss:$8 sps:$4 sm:$0xff]  }
  0x17   :  { %852 = vmatpush1.bf16.msra.mxu0 %v1360_v10  ;;  %v1388_v29 = vld [vmem:[#allocation2 + $0x104] ss:$8 sps:$4 sm:$0xff]   ;;  %v1390_v30 = vld [vmem:[#allocation2] ss:$8 sps:$4 sm:$0xff]   ;;  %v1392_v32 = vld [vmem:[#allocation2 + $0xf4] ss:$8 sps:$4 sm:$0xff]  }
  0x18   :  { %893 = vmatpush1.bf16.msra.mxu1 %v1361_v11  ;;  %853 = vmatprep.subr.bf16.mxu0 %v1362_v12  ;;  %v1391_v31 = vld [vmem:[#allocation2 + $0x100] ss:$8 sps:$4 sm:$0xff]   ;;  %v1394_v33 = vld [vmem:[#allocation2 + $0x1f4] ss:$8 sps:$4 sm:$0xff]   ;;  %v1396_v34 = vld [vmem:[#allocation2 + $0xf0] ss:$8 sps:$4 sm:$0xff]  }
  0x19   :  { %894 = vmatprep.subr.bf16.mxu1 %v1364_v13  ;;  %v1397_v35 = vld [vmem:[#allocation2 + $0x1f0] ss:$8 sps:$4 sm:$0xff]   ;;  %v1398_v36 = vld [vmem:[#allocation2 + $0xe4] ss:$8 sps:$4 sm:$0xff]   ;;  %v1402_v38 = vld [vmem:[#allocation2 + $0xe0] ss:$8 sps:$4 sm:$0xff]  }
  0x1a   :  { %v1400_v37 = vld [vmem:[#allocation2 + $0x1e4] ss:$8 sps:$4 sm:$0xff]   ;;  %v1403_v39 = vld [vmem:[#allocation2 + $0x1e0] ss:$8 sps:$4 sm:$0xff]   ;;  %v1404_v40 = vld [vmem:[#allocation2 + $0xd4] ss:$8 sps:$4 sm:$0xff]  }
  0x1b   :  { %854 = vmatpush1.bf16.msra.mxu0 %v1366_v14  ;;  %v1406_v41 = vld [vmem:[#allocation2 + $0x1d4] ss:$8 sps:$4 sm:$0xff]   ;;  %v1408_v42 = vld [vmem:[#allocation2 + $0xd0] ss:$8 sps:$4 sm:$0xff]   ;;  %v1410_v44 = vld [vmem:[#allocation2 + $0xc4] ss:$8 sps:$4 sm:$0xff]  }
  0x1c   :  { %895 = vmatpush1.bf16.msra.mxu1 %v1367_v15  ;;  %855 = vmatprep.subr.bf16.mxu0 %v1368_v16  ;;  %v1409_v43 = vld [vmem:[#allocation2 + $0x1d0] ss:$8 sps:$4 sm:$0xff]   ;;  %v1412_v45 = vld [vmem:[#allocation2 + $0x1c4] ss:$8 sps:$4 sm:$0xff]   ;;  %v1414_v49 = vld [vmem:[#allocation2 + $0xc0] ss:$8 sps:$4 sm:$0xff]  }
  0x1d   :  { %896 = vmatprep.subr.bf16.mxu1 %v1370_v17  ;;  %v35_v46 = vld [vmem:[%s1681_s0] sm:$0xff]  ;;  %v36_v48 = vld [vmem:[%s1681_s0 + $0x8] sm:$0xff]  ;;  %v1416_v52 = vld [vmem:[#allocation2 + $0xb4] ss:$8 sps:$4 sm:$0xff]   ;;  %vm1590_vm0 = vmmov 0  }
  0x1e   :  { %v1166_v47 = vcombine.high %v35_v46, %v35_v46  ;;  %v1415_v50 = vld [vmem:[#allocation2 + $0x1c0] ss:$8 sps:$4 sm:$0xff]   ;;  %v1168_v51 = vcombine.high %v36_v48, %v36_v48  ;;  %v1418_v53 = vld [vmem:[#allocation2 + $0x1b4] ss:$8 sps:$4 sm:$0xff]   ;;  %v1420_v54 = vld [vmem:[#allocation2 + $0xb0] ss:$8 sps:$4 sm:$0xff]   ;;  %v1165_v6 = vcombine.low %v35_v46, %v35_v46  ;;  %v1167_v7 = vcombine.low %v36_v48, %v36_v48 }
  0x1f   :  { %856 = vmatpush1.bf16.msra.mxu0 %v1372_v18  ;;  %v1421_v55 = vld [vmem:[#allocation2 + $0x1b0] ss:$8 sps:$4 sm:$0xff]   ;;  %v1422_v56 = vld [vmem:[#allocation2 + $0xa4] ss:$8 sps:$4 sm:$0xff]   ;;  %v1426_v58 = vld [vmem:[#allocation2 + $0xa0] ss:$8 sps:$4 sm:$0xff]  }
  0x20   :  { %897 = vmatpush1.bf16.msra.mxu1 %v1373_v19  ;;  %857 = vmatprep.subr.bf16.mxu0 %v1374_v20  ;;  %v1424_v57 = vld [vmem:[#allocation2 + $0x1a4] ss:$8 sps:$4 sm:$0xff]   ;;  %v1427_v59 = vld [vmem:[#allocation2 + $0x1a0] ss:$8 sps:$4 sm:$0xff]   ;;  %v1428_v60 = vld [vmem:[#allocation2 + $0x94] ss:$8 sps:$4 sm:$0xff]  }
  0x21   :  { %898 = vmatprep.subr.bf16.mxu1 %v1376_v21  ;;  %879 = vmatprep.mubr.bf16.mxu0 %v1166_v47  ;;  %v1430_v61 = vld [vmem:[#allocation2 + $0x194] ss:$8 sps:$4 sm:$0xff]   ;;  %v1432_v62 = vld [vmem:[#allocation2 + $0x90] ss:$8 sps:$4 sm:$0xff]   ;;  %v1434_v0 = vld [vmem:[#allocation2 + $0x84] ss:$8 sps:$4 sm:$0xff]  }
  0x22   :  { %920 = vmatprep.mubr.bf16.mxu1 %v1168_v51  ;;  %v1433_v63 = vld [vmem:[#allocation2 + $0x190] ss:$8 sps:$4 sm:$0xff]   ;;  %v1436_v1 = vld [vmem:[#allocation2 + $0x184] ss:$8 sps:$4 sm:$0xff]   ;;  %v1438_v2 = vld [vmem:[#allocation2 + $0x80] ss:$8 sps:$4 sm:$0xff]  }
  0x23   :  { %858 = vmatpush1.bf16.msra.mxu0 %v1378_v22  ;;  %v1439_v3 = vld [vmem:[#allocation2 + $0x180] ss:$8 sps:$4 sm:$0xff]   ;;  %v1446_v4 = vld [vmem:[#allocation2 + $0x274] ss:$8 sps:$4 sm:$0xff]   ;;  %v1444_v8 = vld [vmem:[#allocation2 + $0x270] ss:$8 sps:$4 sm:$0xff]  }
  0x24   :  { %899 = vmatpush1.bf16.msra.mxu1 %v1379_v23  ;;  %859 = vmatprep.subr.bf16.mxu0 %v1380_v24  ;;  %v1449_v5 = vld [vmem:[#allocation2 + $0x374] ss:$8 sps:$4 sm:$0xff]   ;;  %v1447_v9 = vld [vmem:[#allocation2 + $0x370] ss:$8 sps:$4 sm:$0xff]   ;;  %v1452_v10 = vld [vmem:[#allocation2 + $0x264] ss:$8 sps:$4 sm:$0xff]  }
  0x25   :  { %900 = vmatprep.subr.bf16.mxu1 %v1382_v25  ;;  %v1455_v11 = vld [vmem:[#allocation2 + $0x364] ss:$8 sps:$4 sm:$0xff]   ;;  %v1450_v12 = vld [vmem:[#allocation2 + $0x260] ss:$8 sps:$4 sm:$0xff]   ;;  %v1458_v14 = vld [vmem:[#allocation2 + $0x254] ss:$8 sps:$4 sm:$0xff]  }
  0x26   :  { %v1453_v13 = vld [vmem:[#allocation2 + $0x360] ss:$8 sps:$4 sm:$0xff]   ;;  %v1461_v15 = vld [vmem:[#allocation2 + $0x354] ss:$8 sps:$4 sm:$0xff]   ;;  %v1456_v16 = vld [vmem:[#allocation2 + $0x250] ss:$8 sps:$4 sm:$0xff]  }
  0x27   :  { %860 = vmatpush1.bf16.msra.mxu0 %v1384_v26  ;;  %v1459_v17 = vld [vmem:[#allocation2 + $0x350] ss:$8 sps:$4 sm:$0xff]   ;;  %v1464_v18 = vld [vmem:[#allocation2 + $0x244] ss:$8 sps:$4 sm:$0xff]   ;;  %v1462_v20 = vld [vmem:[#allocation2 + $0x240] ss:$8 sps:$4 sm:$0xff]  }
  0x28   :  { %901 = vmatpush1.bf16.msra.mxu1 %v1385_v27  ;;  %861 = vmatprep.subr.bf16.mxu0 %v1386_v28  ;;  %v1467_v19 = vld [vmem:[#allocation2 + $0x344] ss:$8 sps:$4 sm:$0xff]   ;;  %v1465_v21 = vld [vmem:[#allocation2 + $0x340] ss:$8 sps:$4 sm:$0xff]   ;;  %v1470_v22 = vld [vmem:[#allocation2 + $0x234] ss:$8 sps:$4 sm:$0xff]  }
  0x29   :  { %902 = vmatprep.subr.bf16.mxu1 %v1388_v29  ;;  %v1473_v23 = vld [vmem:[#allocation2 + $0x334] ss:$8 sps:$4 sm:$0xff]   ;;  %v1468_v24 = vld [vmem:[#allocation2 + $0x230] ss:$8 sps:$4 sm:$0xff]   ;;  %v1476_v26 = vld [vmem:[#allocation2 + $0x224] ss:$8 sps:$4 sm:$0xff]  }
  0x2a   :  { %v1471_v25 = vld [vmem:[#allocation2 + $0x330] ss:$8 sps:$4 sm:$0xff]   ;;  %v1479_v27 = vld [vmem:[#allocation2 + $0x324] ss:$8 sps:$4 sm:$0xff]   ;;  %v1474_v28 = vld [vmem:[#allocation2 + $0x220] ss:$8 sps:$4 sm:$0xff]  }
  0x2b   :  { %862 = vmatpush1.bf16.msra.mxu0 %v1390_v30  ;;  %v1477_v29 = vld [vmem:[#allocation2 + $0x320] ss:$8 sps:$4 sm:$0xff]   ;;  %v1482_v30 = vld [vmem:[#allocation2 + $0x214] ss:$8 sps:$4 sm:$0xff]   ;;  %v1500_v46 = vld [vmem:[#allocation2 + $0x2e4] ss:$8 sps:$4 sm:$0xff]  }
  0x2c   :  { %903 = vmatpush1.bf16.msra.mxu1 %v1391_v31  ;;  %863 = vmatprep.subr.bf16.mxu0 %v1392_v32  ;;  %v1485_v31 = vld [vmem:[#allocation2 + $0x314] ss:$8 sps:$4 sm:$0xff]   ;;  %v1480_v32 = vld [vmem:[#allocation2 + $0x210] ss:$8 sps:$4 sm:$0xff]   ;;  %v1503_v47 = vld [vmem:[#allocation2 + $0x3e4] ss:$8 sps:$4 sm:$0xff]  }
  0x2d   :  { %904 = vmatprep.subr.bf16.mxu1 %v1394_v33  ;;  %v1483_v33 = vld [vmem:[#allocation2 + $0x310] ss:$8 sps:$4 sm:$0xff]   ;;  %v1498_v48 = vld [vmem:[#allocation2 + $0x2e0] ss:$8 sps:$4 sm:$0xff]   ;;  %v1509_v51 = vld [vmem:[#allocation2 + $0x3d4] ss:$8 sps:$4 sm:$0xff]  }
  0x2f   :  { %864 = vmatpush2.bf16.msra.mxu0 %v1396_v34  ;;  %v1633_v34 = vld [vmem:[%s1681_s0 + $0x10] sm:$0xff] }
  0x30   :  { %905 = vmatpush2.bf16.msra.mxu1 %v1397_v35  ;;  %865 = vmatprep.subr.bf16.mxu0 %v1398_v36  ;;  %v1638_v35 = vld [vmem:[%s1681_s0 + $0x18] sm:$0xff]  ;;  %v1488_v36 = vld [vmem:[#allocation2 + $0x204] ss:$8 sps:$4 sm:$0xff]  }
  0x31   :  { %906 = vmatprep.subr.bf16.mxu1 %v1400_v37  ;;  %v1491_v37 = vld [vmem:[#allocation2 + $0x304] ss:$8 sps:$4 sm:$0xff]  }
  0x33   :  { %866 = vmatpush2.bf16.msra.mxu0 %v1402_v38  ;;  %v1170_v38 = vcombine.high %v1633_v34, %v1633_v34 }
  0x34   :  { %907 = vmatpush2.bf16.msra.mxu1 %v1403_v39  ;;  %867 = vmatprep.subr.bf16.mxu0 %v1404_v40  ;;  %v1172_v39 = vcombine.high %v1638_v35, %v1638_v35  ;;  %v1486_v40 = vld [vmem:[#allocation2 + $0x200] ss:$8 sps:$4 sm:$0xff]  }
  0x35   :  { %908 = vmatprep.subr.bf16.mxu1 %v1406_v41  ;;  %v1489_v41 = vld [vmem:[#allocation2 + $0x300] ss:$8 sps:$4 sm:$0xff]  }
  0x37   :  { %868 = vmatpush2.bf16.msra.mxu0 %v1408_v42  ;;  %v1494_v42 = vld [vmem:[#allocation2 + $0x2f4] ss:$8 sps:$4 sm:$0xff]  }
  0x38   :  { %909 = vmatpush2.bf16.msra.mxu1 %v1409_v43  ;;  %869 = vmatprep.subr.bf16.mxu0 %v1410_v44  ;;  %v1497_v43 = vld [vmem:[#allocation2 + $0x3f4] ss:$8 sps:$4 sm:$0xff]   ;;  %v1492_v44 = vld [vmem:[#allocation2 + $0x2f0] ss:$8 sps:$4 sm:$0xff]  }
  0x39   :  { %910 = vmatprep.subr.bf16.mxu1 %v1412_v45  ;;  %v1495_v45 = vld [vmem:[#allocation2 + $0x3f0] ss:$8 sps:$4 sm:$0xff]  }
  0x3b   :  { %870 = vmatpush2.bf16.msra.mxu0 %v1414_v49  ;;  %v1501_v49 = vld [vmem:[#allocation2 + $0x3e0] ss:$8 sps:$4 sm:$0xff]  }
  0x3c   :  { %911 = vmatpush2.bf16.msra.mxu1 %v1415_v50  ;;  %871 = vmatprep.subr.bf16.mxu0 %v1416_v52  ;;  %v1506_v50 = vld [vmem:[#allocation2 + $0x2d4] ss:$8 sps:$4 sm:$0xff]   ;;  %v1504_v52 = vld [vmem:[#allocation2 + $0x2d0] ss:$8 sps:$4 sm:$0xff]  }
  0x3d   :  { %912 = vmatprep.subr.bf16.mxu1 %v1418_v53  ;;  %v1507_v53 = vld [vmem:[#allocation2 + $0x3d0] ss:$8 sps:$4 sm:$0xff]  }
  0x3f   :  { %872 = vmatpush2.bf16.msra.mxu0 %v1420_v54  ;;  %v1512_v54 = vld [vmem:[#allocation2 + $0x2c4] ss:$8 sps:$4 sm:$0xff]  }
  0x40   :  { %913 = vmatpush2.bf16.msra.mxu1 %v1421_v55  ;;  %873 = vmatprep.subr.bf16.mxu0 %v1422_v56  ;;  %v1515_v55 = vld [vmem:[#allocation2 + $0x3c4] ss:$8 sps:$4 sm:$0xff]   ;;  %v1510_v56 = vld [vmem:[#allocation2 + $0x2c0] ss:$8 sps:$4 sm:$0xff]  }
  0x41   :  { %914 = vmatprep.subr.bf16.mxu1 %v1424_v57  ;;  %v1513_v57 = vld [vmem:[#allocation2 + $0x3c0] ss:$8 sps:$4 sm:$0xff]  }
  0x43   :  { %874 = vmatpush2.bf16.msra.mxu0 %v1426_v58  ;;  %v1518_v58 = vld [vmem:[#allocation2 + $0x2b4] ss:$8 sps:$4 sm:$0xff]  }
  0x44   :  { %915 = vmatpush2.bf16.msra.mxu1 %v1427_v59  ;;  %875 = vmatprep.subr.bf16.mxu0 %v1428_v60  ;;  %v1521_v59 = vld [vmem:[#allocation2 + $0x3b4] ss:$8 sps:$4 sm:$0xff]   ;;  %v1516_v60 = vld [vmem:[#allocation2 + $0x2b0] ss:$8 sps:$4 sm:$0xff]  }
  0x45   :  { %916 = vmatprep.subr.bf16.mxu1 %v1430_v61  ;;  %v1519_v61 = vld [vmem:[#allocation2 + $0x3b0] ss:$8 sps:$4 sm:$0xff]  }
  0x47   :  { %876 = vmatpush2.bf16.msra.mxu0 %v1432_v62  ;;  %v1524_v62 = vld [vmem:[#allocation2 + $0x2a4] ss:$8 sps:$4 sm:$0xff]  }
  0x48   :  { %917 = vmatpush2.bf16.msra.mxu1 %v1433_v63  ;;  %877 = vmatprep.subr.bf16.mxu0 %v1434_v0  ;;  %v1527_v63 = vld [vmem:[#allocation2 + $0x3a4] ss:$8 sps:$4 sm:$0xff]   ;;  %v1522_v0 = vld [vmem:[#allocation2 + $0x2a0] ss:$8 sps:$4 sm:$0xff]  }
  0x49   :  { %918 = vmatprep.subr.bf16.mxu1 %v1436_v1  ;;  %v1525_v1 = vld [vmem:[#allocation2 + $0x3a0] ss:$8 sps:$4 sm:$0xff]  }
  0x4b   :  { %878 = vmatpush2.bf16.msra.mxu0 %v1438_v2  ;;  %v1530_v2 = vld [vmem:[#allocation2 + $0x294] ss:$8 sps:$4 sm:$0xff]  }
  0x4c   :  { %919 = vmatpush2.bf16.msra.mxu1 %v1439_v3  ;;  %929 = vmatprep.subr.bf16.mxu0 %v1446_v4  ;;  %v1533_v3 = vld [vmem:[#allocation2 + $0x394] ss:$8 sps:$4 sm:$0xff]   ;;  %v1528_v4 = vld [vmem:[#allocation2 + $0x290] ss:$8 sps:$4 sm:$0xff]  }
  0x4d   :  { %970 = vmatprep.subr.bf16.mxu1 %v1449_v5  ;;  %v1531_v5 = vld [vmem:[#allocation2 + $0x390] ss:$8 sps:$4 sm:$0xff]  }
  0x4e   :  { %880 = vmatmul.mubr.bf16.vlgmr.msra.gmra.mxu0 %v1165_v6  ;;  %v1536_v6 = vld [vmem:[#allocation2 + $0x284] ss:$8 sps:$4 sm:$0xff]  }
  0x4f   :  { %921 = vmatmul.mubr.bf16.vlgmr.msra.gmra.mxu1 %v1167_v7  ;;  %930 = vmatpush1.bf16.msra.mxu0 %v1444_v8  ;;  %v1539_v7 = vld [vmem:[#allocation2 + $0x384] ss:$8 sps:$4 sm:$0xff]   ;;  %v1534_v8 = vld [vmem:[#allocation2 + $0x280] ss:$8 sps:$4 sm:$0xff]  }
  0x50   :  { %971 = vmatpush1.bf16.msra.mxu1 %v1447_v9  ;;  %931 = vmatprep.subr.bf16.mxu0 %v1452_v10  ;;  %v1537_v9 = vld [vmem:[#allocation2 + $0x380] ss:$8 sps:$4 sm:$0xff]   ;;  %v1169_v10 = vcombine.low %v1633_v34, %v1633_v34 }
  0x51   :  { %972 = vmatprep.subr.bf16.mxu1 %v1455_v11  ;;  %961 = vmatprep.mubr.bf16.mxu0 %v1170_v38  ;;  %v1171_v11 = vcombine.low %v1638_v35, %v1638_v35 }
  0x52   :  { %1002 = vmatprep.mubr.bf16.mxu1 %v1172_v39 }
  0x53   :  { %932 = vmatpush1.bf16.msra.mxu0 %v1450_v12  ;;  %v1544_v12 = vld [vmem:[%s1684_s3 + $0x38] sm:$0xff]  }
  0x54   :  { %973 = vmatpush1.bf16.msra.mxu1 %v1453_v13  ;;  %933 = vmatprep.subr.bf16.mxu0 %v1458_v14  ;;  %v1589_v13 = vmov 0.0   ;;  %v1545_v14 = vld [vmem:[%s1684_s3 + $0x30] sm:$0xff]  }
  0x55   :  { %974 = vmatprep.subr.bf16.mxu1 %v1461_v15  ;;  %v1546_v15 = vld [vmem:[%s1684_s3 + $0x28] sm:$0xff]  }
  0x57   :  { %934 = vmatpush1.bf16.msra.mxu0 %v1456_v16  ;;  %v1547_v16 = vld [vmem:[%s1684_s3 + $0x20] sm:$0xff]  }
  0x58   :  { %975 = vmatpush1.bf16.msra.mxu1 %v1459_v17  ;;  %935 = vmatprep.subr.bf16.mxu0 %v1464_v18  ;;  %v1548_v17 = vld [vmem:[%s1684_s3 + $0x18] sm:$0xff]   ;;  %v1549_v18 = vld [vmem:[%s1684_s3 + $0x10] sm:$0xff]  }
  0x59   :  { %976 = vmatprep.subr.bf16.mxu1 %v1467_v19  ;;  %v1550_v19 = vld [vmem:[%s1684_s3 + $0x8] sm:$0xff]  }
  0x5b   :  { %936 = vmatpush1.bf16.msra.mxu0 %v1462_v20  ;;  %v1551_v20 = vld [vmem:[%s1684_s3] sm:$0xff]  }
  0x5c   :  { %977 = vmatpush1.bf16.msra.mxu1 %v1465_v21  ;;  %937 = vmatprep.subr.bf16.mxu0 %v1470_v22  ;;  %v169_v21 = vlaneseq }
  0x5d   :  { %978 = vmatprep.subr.bf16.mxu1 %v1473_v23 }
  0x5e   :  { %v170_v22 = vshrl.u32 %v169_v21, 7 }
  0x5f   :  { %938 = vmatpush1.bf16.msra.mxu0 %v1468_v24  ;;  %v167_v24 = vld [vmem:[%s1683_s2] sm:$0x3] }
  0x60   :  { %979 = vmatpush1.bf16.msra.mxu1 %v1471_v25  ;;  %939 = vmatprep.subr.bf16.mxu0 %v1476_v26  ;;  %v175_v23 = vsub.s32 1, %v170_v22 }
  0x61   :  { %980 = vmatprep.subr.bf16.mxu1 %v1479_v27 }
  0x62   :  { %v176_v25 = vrot.slane %v167_v24, %v175_v23 }
  0x63   :  { %940 = vmatpush1.bf16.msra.mxu0 %v1474_v28 }
  0x64   :  { %981 = vmatpush1.bf16.msra.mxu1 %v1477_v29  ;;  %941 = vmatprep.subr.bf16.mxu0 %v1482_v30 }
  0x65   :  { %982 = vmatprep.subr.bf16.mxu1 %v1485_v31 }
  0x67   :  { %942 = vmatpush1.bf16.msra.mxu0 %v1480_v32 }
  0x68   :  { %983 = vmatpush1.bf16.msra.mxu1 %v1483_v33  ;;  %943 = vmatprep.subr.bf16.mxu0 %v1488_v36  ;;  %v171_v36 = vsub.s32 0, %v170_v22 }
  0x69   :  { %984 = vmatprep.subr.bf16.mxu1 %v1491_v37 }
  0x6a   :  { %v172_v37 = vrot.slane %v167_v24, %v171_v36 }
  0x6b   :  { %944 = vmatpush1.bf16.msra.mxu0 %v1486_v40 }
  0x6c   :  { %985 = vmatpush1.bf16.msra.mxu1 %v1489_v41  ;;  %945 = vmatprep.subr.bf16.mxu0 %v1494_v42 }
  0x6d   :  { %986 = vmatprep.subr.bf16.mxu1 %v1497_v43 }
  0x6f   :  { %946 = vmatpush2.bf16.msra.mxu0 %v1492_v44 }
  0x70   :  { %987 = vmatpush2.bf16.msra.mxu1 %v1495_v45  ;;  %947 = vmatprep.subr.bf16.mxu0 %v1500_v46 }
  0x71   :  { %988 = vmatprep.subr.bf16.mxu1 %v1503_v47 }
  0x73   :  { %948 = vmatpush2.bf16.msra.mxu0 %v1498_v48 }
  0x74   :  { %989 = vmatpush2.bf16.msra.mxu1 %v1501_v49  ;;  %949 = vmatprep.subr.bf16.mxu0 %v1506_v50 }
  0x75   :  { %990 = vmatprep.subr.bf16.mxu1 %v1509_v51 }
  0x77   :  { %950 = vmatpush2.bf16.msra.mxu0 %v1504_v52 }
  0x78   :  { %991 = vmatpush2.bf16.msra.mxu1 %v1507_v53  ;;  %951 = vmatprep.subr.bf16.mxu0 %v1512_v54  ;;  %v1301_v54 = vld [vmem:[%s1685_s4] ss:$0 sm:$0xff] }
  0x79   :  { %992 = vmatprep.subr.bf16.mxu1 %v1515_v55 }
  0x7b   :  { %952 = vmatpush2.bf16.msra.mxu0 %v1510_v56 }
  0x7c   :  { %993 = vmatpush2.bf16.msra.mxu1 %v1513_v57  ;;  %953 = vmatprep.subr.bf16.mxu0 %v1518_v58 }
  0x7d   :  { %994 = vmatprep.subr.bf16.mxu1 %v1521_v59 }
  0x7f   :  { %954 = vmatpush2.bf16.msra.mxu0 %v1516_v60 }
  0x80   :  { %995 = vmatpush2.bf16.msra.mxu1 %v1519_v61  ;;  %955 = vmatprep.subr.bf16.mxu0 %v1524_v62 }
  0x81   :  { %996 = vmatprep.subr.bf16.mxu1 %v1527_v63 }
  0x83   :  { %956 = vmatpush2.bf16.msra.mxu0 %v1522_v0 }
  0x84   :  { %997 = vmatpush2.bf16.msra.mxu1 %v1525_v1  ;;  %957 = vmatprep.subr.bf16.mxu0 %v1530_v2 }
  0x85   :  { %998 = vmatprep.subr.bf16.mxu1 %v1533_v3 }
  0x87   :  { %958 = vmatpush2.bf16.msra.mxu0 %v1528_v4 }
  0x88   :  { %999 = vmatpush2.bf16.msra.mxu1 %v1531_v5  ;;  %959 = vmatprep.subr.bf16.mxu0 %v1536_v6 }
  0x89   :  { %1000 = vmatprep.subr.bf16.mxu1 %v1539_v7 }
  0x8b   :  { %960 = vmatpush2.bf16.msra.mxu0 %v1534_v8 }
  0x8c   :  { %1001 = vmatpush2.bf16.msra.mxu1 %v1537_v9  ;;  %1319 = vmatprep.subr.bf16.mxu0 %v1589_v13  ;;  %v1143_v9 = vand.u32 127, %v169_v21 }
  0x8e   :  { %962 = vmatmul.mubr.bf16.vlgmr.msra.gmra.mxu0 %v1169_v10  ;;  %vm1144_vm1 = vcmp.lt.s32.totalorder %v1143_v9, 16 }
  0x8f   :  { %1003 = vmatmul.mubr.bf16.vlgmr.msra.gmra.mxu1 %v1171_v11  ;;  %1320 = vmatpush3.bf16.msra.mxu0 %v1544_v12 }
  0x90   :  { %1321 = vmatprep.subr.bf16.mxu0 %v1589_v13  ;;  %1335 = vmatprep.mubr.msk.bf16.mxu0 %vm1590_vm0, %v1589_v13 }
  0x93   :  { %1322 = vmatpush3.bf16.msra.mxu0 %v1545_v14 }
  0x94   :  { %1323 = vmatprep.subr.bf16.mxu0 %v1589_v13 }
  0x97   :  { %1324 = vmatpush3.bf16.msra.mxu0 %v1546_v15 }
  0x98   :  { %1325 = vmatprep.subr.bf16.mxu0 %v1589_v13 }
  0x9b   :  { %1326 = vmatpush3.bf16.msra.mxu0 %v1547_v16 }
  0x9c   :  { %1327 = vmatprep.subr.bf16.mxu0 %v1589_v13 }
  0x9f   :  { %1328 = vmatpush3.bf16.msra.mxu0 %v1548_v17 }
  0xa0   :  { %1329 = vmatprep.subr.bf16.mxu0 %v1589_v13 }
  0xa3   :  { %1330 = vmatpush3.bf16.msra.mxu0 %v1549_v18 }
  0xa4   :  { %1331 = vmatprep.subr.bf16.mxu0 %v1589_v13 }
  0xa7   :  { %1332 = vmatpush3.bf16.msra.mxu0 %v1550_v19 }
  0xa8   :  { %1333 = vmatprep.subr.bf16.mxu0 %v1589_v13 }
  0xab   :  { %1334 = vmatpush3.bf16.msra.mxu0 %v1551_v20 }
 0x10e   :  { %v881_v26 = vpop.f32.mrf.mxu0 }
 0x10f   :  { %v922_v27 = vpop.f32.mrf.mxu1  ;;  %v882_v38 = vadd.f32 %v881_v26, %v172_v37 }
 0x110   :  { %v883_v28 = vpop.f32.mrf.mxu0 }
 0x111   :  { %v924_v29 = vpop.f32.mrf.mxu1  ;;  %v884_v30 = vadd.f32 %v883_v28, %v176_v25  ;;  %v923_v39 = vadd.f32 %v922_v27, %v882_v38 }
 0x112   :  { %v885_v31 = vpop.f32.mrf.mxu0 }
 0x113   :  { %v926_v32 = vpop.f32.mrf.mxu1  ;;  %v925_v33 = vadd.f32 %v924_v29, %v884_v30 }
 0x114   :  { %v886_v34 = vpop.f32.mrf.mxu0 }
 0x115   :  { %v927_v35 = vpop.f32.mrf.mxu1 }
 0x14e   :  { %v963_v40 = vpop.f32.mrf.mxu0 }
 0x14f   :  { %v1004_v41 = vpop.f32.mrf.mxu1  ;;  %v964_v42 = vadd.f32 %v963_v40, %v923_v39 }
 0x150   :  { %v965_v43 = vpop.f32.mrf.mxu0 }
 0x151   :  { %v1006_v44 = vpop.f32.mrf.mxu1  ;;  %v1005_v45 = vadd.f32 %v1004_v41, %v964_v42  ;;  %v966_v46 = vadd.f32 %v965_v43, %v925_v33 }
 0x152   :  { %v967_v47 = vpop.f32.mrf.mxu0 }
 0x153   :  { %v1008_v48 = vpop.f32.mrf.mxu1  ;;  %v1011_v49 = vmax.f32 %v1005_v45, 0.0  ;;  %v1007_v50 = vadd.f32 %v1006_v44, %v966_v46 }
 0x154   :  { %v968_v51 = vpop.f32.mrf.mxu0 }
 0x155   :  { %v1009_v52 = vpop.f32.mrf.mxu1  ;;  %v1012_v53 = vpack.c.bf16 %v1011_v49, %v1011_v49 }
 0x157   :  { %1336 = vmatmul.mubr.bf16.vlgmr.msra.gmra.mxu0 %v1012_v53 }
 0x217   :  { %v1118_v55 = vpop.f32.mrf.mxu0 }
 0x218   :  { %v1119_v56 = vadd.f32 %v1301_v54, %v1118_v55 }
 0x219   :  { %v1337_v57 = vpop.f32.mrf.mxu0 }
 0x21a   :  { %1124 = vmax.xlane.f32.xlu0 %v1119_v56 }
 0x21b   :  { %v1121_v58 = vpop.f32.mrf.mxu0 }
 0x21d   :  { %v1338_v59 = vpop.f32.mrf.mxu0 }
 0x21e   :  { %1133 = vmax.xlane.f32.xlu0 %v1007_v50 }
 0x2a3   :  { %v1125_v60 = vpop.xlane.xlu0 %1124 }
 0x2a4   :  { %v1126_v61 = vsub.f32 %v1119_v56, %v1125_v60 }
 0x2a6   :  { %v1127_v62 = vmul.f32 1.442695, %v1126_v61 }
 0x2a7   :  { %v1134_v63 = vpop.xlane.xlu0 %1133 }
 0x2a8   :  { %1552 = vpow2.f32 %v1127_v62  ;;  %v1135_v0 = vsub.f32 %v1007_v50, %v1134_v63 }
 0x2aa   :  { %v1136_v1 = vmul.f32 1.442695, %v1135_v0 }
 0x2ac   :  { %1554 = vpow2.f32 %v1136_v1 }
 0x2b5   :  { %v1553_v2 = vpop.eup %1552 }
 0x2b6   :  { %1129 = vadd.xlane.f32.xlu1 %v1553_v2 }
 0x2b9   :  { %v1555_v3 = vpop.eup %1554 }
 0x2ba   :  { %1138 = vadd.xlane.f32.xlu1 %v1555_v3 }
 0x33f   :  { %v1130_v4 = vpop.xlane.xlu1 %1129 }
 0x340   :  { %1556 = vrcp.f32 %v1130_v4 }
 0x343   :  { %v1139_v5 = vpop.xlane.xlu1 %1138 }
 0x344   :  { %1558 = vrcp.f32 %v1139_v5 }
 0x34d   :  { %v1557_v6 = vpop.eup %1556 }
 0x34e   :  { %v1132_v7 = vmul.f32 %v1557_v6, %v1553_v2 }
 0x350   :  { %v1145_v11 = vmul.f32 7.0, %v1132_v7 }
 0x351   :  { %v1559_v8 = vpop.eup %1558 }
 0x352   :  { %v1141_v10 = vmul.f32 %v1559_v8, %v1555_v3 }
 0x354   :  { %v1146_v12 = vmul.f32 3.0, %v1141_v10 }
 0x356   :  { %v1147_v13 = vadd.f32 %v1146_v12, %v1145_v11 }
 0x358   :  { %v1148_v14 = vsel %vm1144_vm1, %v1147_v13, -1e+30 }
 0x359   :  { %1149 = vmax.xlane.f32.xlu0 %v1148_v14 }
 0x3e2   :  { %v1150_v15 = vpop.xlane.xlu0 %1149 }
 0x3e3   :  { %v1151_v16 = vsub.f32 %v1148_v14, %v1150_v15 }
 0x3e5   :  { %v1152_v17 = vmul.f32 1.442695, %v1151_v16 }
 0x3e7   :  { %1560 = vpow2.f32 %v1152_v17 }
 0x3f4   :  { %v1561_v18 = vpop.eup %1560 }
 0x3f5   :  { %1154 = vadd.xlane.f32.xlu1 %v1561_v18 }
 0x47e   :  { %v1155_v19 = vpop.xlane.xlu1 %1154 }
 0x47f   :  { %1562 = vlog2.f32 %v1155_v19 }
 0x48c   :  { %v1563_v20 = vpop.eup %1562 }
 0x48d   :  { %v1157_v22 = vmul.f32 0.6931472, %v1563_v20 }
 0x48f   :  { %v1158_v23 = vsub.f32 %v1151_v16, %v1157_v22 }
 0x491   :  { %1159 = vst [vmem:[%s1686_s5] sm:$0xff] %v1158_v23 }
 0x492   :  { %1164 = vsyncpa [#allocation3], 1 }

</bundles_post_ra>
